<compile_context>
chip_gen: v6e
topology: v6e:2x2x1
jax: 0.10.0
libtpu: 0.0.40
codegen_flags: <defaults>
</compile_context>

<pallas_src>
import jax
import jax.numpy as jnp
from jax.experimental import pallas as pl
from jax.experimental.pallas import tpu as pltpu

_NEG_SLOPE = 0.01  # torch nn.LeakyReLU default negative_slope


def _regressor_kernel(x_ref, w_ref, b_ref, o_ref):
    # x_ref: (TM, I)   w_ref: (I, H)   b_ref: (1, H)   o_ref: (TM, H)
    y = jnp.dot(x_ref[...], w_ref[...], preferred_element_type=jnp.float32)
    y = y + b_ref[...]
    o_ref[...] = jnp.where(y > 0, y, jnp.float32(_NEG_SLOPE) * y).astype(o_ref.dtype)


def _round_up(v, m):
    return ((v + m - 1) // m) * m


def _cdiv(a, b):
    return (a + b - 1) // b


def regressor_forward(x, weight, bias):
    """x: (B, S, I) f32; weight: (H, I) torch nn.Linear layout; bias: (H,).

    Returns (B, S*H) = LeakyReLU(x @ W.T + b).flatten(start_dim=-2).
    """
    B, S, I = x.shape
    H = weight.shape[0]
    M = B * S

    # ---- block-row (TM) selection ------------------------------------------
    # Sublane (8) alignment only; lane dims (I, H) use full-array blocks.
    M8 = _round_up(M, 8)
    # <=512 rows per block; >=2 blocks when possible so v7x's 2 TCs both work.
    nblocks = max(_cdiv(M8, 512), 2 if M8 >= 16 else 1)
    TM = _round_up(_cdiv(M8, nblocks), 8)

    # VMEM guard: resident weight (double-buffered by the pipeline) plus
    # double-buffered x/out blocks must stay well under v7x's 64 MiB VMEM.
    budget = 48 * 1024 * 1024
    while TM > 8 and 4 * (2 * TM * (I + H) + 2 * I * H) > budget:
        TM = _round_up(_cdiv(TM, 2), 8)
    # (If the weight alone exceeded the budget we'd need a K/H-tiled variant;
    #  not the case for prosit regressor shapes.)

    Mp = _round_up(M8, TM)
    grid = (Mp // TM,)

    # ---- operand prep (cheap, one-time) --------------------------------------
    x2d = x.reshape(M, I)
    if Mp != M:  # pad rows only when M isn't already block-aligned
        x2d = jnp.pad(x2d, ((0, Mp - M), (0, 0)))
    w_t = weight.T                 # (I, H): plain (K, N) RHS for the MXU
    b2d = bias.reshape(1, H)

    vmem_need = 4 * (2 * TM * I + 2 * TM * H + 2 * I * H + 2 * H) + (2 << 20)
    vmem_limit = min(max(int(vmem_need), 16 * 1024 * 1024), budget)

    out = pl.pallas_call(
        _regressor_kernel,
        out_shape=jax.ShapeDtypeStruct((Mp, H), x.dtype),
        grid_spec=pltpu.PrefetchScalarGridSpec(
            num_scalar_prefetch=0,
            grid=grid,
            in_specs=[
                pl.BlockSpec((TM, I), lambda i: (i, 0)),   # x rows, streamed
                pl.BlockSpec((I, H), lambda i: (0, 0)),    # weight, resident
                pl.BlockSpec((1, H), lambda i: (0, 0)),    # bias, resident
            ],
            out_specs=pl.BlockSpec((TM, H), lambda i: (i, 0)),
        ),
        compiler_params=pltpu.CompilerParams(
            dimension_semantics=("parallel",),
            vmem_limit_bytes=vmem_limit,
        ),
        cost_estimate=pl.CostEstimate(
            flops=2 * Mp * H * I,
            transcendentals=0,
            bytes_accessed=4 * (Mp * I + I * H + Mp * H + H),
        ),
    )(x2d, w_t, b2d)

    # Strip row padding; flatten(start_dim=-2): (M, H) row-major == (B, S*H).
    if Mp != M:
        out = out[:M]
    return out.reshape(B, S * H)


if __name__ == "__main__":
    key = jax.random.PRNGKey(0)
    k_x, k_w, k_b = jax.random.split(key, 3)

    B, S = 2, 8
    input_size, hidden_size = 32, 32

    x = jax.random.normal(k_x, (B, S, input_size), dtype=jnp.float32)
    # torch nn.Linear parameter shapes: W (H, I), b (H,)
    weight = jax.random.normal(k_w, (hidden_size, input_size), dtype=jnp.float32) * 0.1
    bias = jax.random.normal(k_b, (hidden_size,), dtype=jnp.float32) * 0.1

    out = jax.jit(regressor_forward)(x, weight, bias)
    jax.block_until_ready(out)

    # sanity check against plain JAX reference
    ref = x @ weight.T + bias
    ref = jnp.where(ref > 0, ref, 0.01 * ref).reshape(B, S * hidden_size)
    assert out.shape == (B, S * hidden_size)
    assert jnp.allclose(out, ref, atol=1e-5, rtol=1e-5)

    print("KERNEL_OK")
</pallas_src>

<mosaic_0001>
module attributes {stable_mosaic.version = 11 : i64} {
  func.func @_regressor_kernel(%arg0: i32, %arg1: memref<8x32xf32, #tpu.memory_space<vmem>>, %arg2: memref<32x32xf32, #tpu.memory_space<vmem>>, %arg3: memref<1x32xf32, #tpu.memory_space<vmem>>, %arg4: memref<8x32xf32, #tpu.memory_space<vmem>>) attributes {dimension_semantics = [#tpu.dimension_semantics<parallel>], iteration_bounds = array<i64: 2>, scalar_prefetch = 0 : i64, scratch_operands = 0 : i64, tpu.core_type = #tpu.core_type<tc>, window_params = [{transform_indices = @transform_0, window_bounds = array<i64: 8, 32>}, {pipeline_mode = #tpu.pipeline_mode<synchronous>, transform_indices = @transform_1, window_bounds = array<i64: 32, 32>}, {pipeline_mode = #tpu.pipeline_mode<synchronous>, transform_indices = @transform_2, window_bounds = array<i64: 1, 32>}, {transform_indices = @transform_3, window_bounds = array<i64: 8, 32>}]} {
    %c0 = arith.constant 0 : index
    %c0_0 = arith.constant 0 : index
    %0 = vector.load %arg1[%c0, %c0_0] : memref<8x32xf32, #tpu.memory_space<vmem>>, vector<8x32xf32>
    %c0_1 = arith.constant 0 : index
    %c0_2 = arith.constant 0 : index
    %1 = vector.load %arg2[%c0_1, %c0_2] : memref<32x32xf32, #tpu.memory_space<vmem>>, vector<32x32xf32>
    %cst = arith.constant dense<0.000000e+00> : vector<8x32xf32>
    %2 = tpu.matmul %0, %1, %cst {dimension_numbers = #tpu.dot_dimension_numbers<[1], [0], [0], [1], [0, 0, 1, 1], [], []>} : vector<8x32xf32>, vector<32x32xf32>, vector<8x32xf32> -> vector<8x32xf32>
    %c0_3 = arith.constant 0 : index
    %c0_4 = arith.constant 0 : index
    %3 = vector.load %arg3[%c0_3, %c0_4] : memref<1x32xf32, #tpu.memory_space<vmem>>, vector<1x32xf32>
    %4 = vector.broadcast %3 : vector<1x32xf32> to vector<8x32xf32>
    %5 = arith.addf %2, %4 : vector<8x32xf32>
    %cst_5 = arith.constant 0.000000e+00 : f32
    %6 = vector.broadcast %cst_5 : f32 to vector<8x32xf32>
    %7 = arith.cmpf ogt, %5, %6 : vector<8x32xf32>
    %cst_6 = arith.constant 0.00999999977 : f32
    %8 = vector.broadcast %cst_6 : f32 to vector<8x32xf32>
    %9 = arith.mulf %8, %5 : vector<8x32xf32>
    %10 = arith.select %7, %5, %9 : vector<8x32xi1>, vector<8x32xf32>
    %c0_7 = arith.constant 0 : index
    %c0_8 = arith.constant 0 : index
    %11 = vector.load %arg4[%c0_7, %c0_8] : memref<8x32xf32, #tpu.memory_space<vmem>>, vector<8x32xf32>
    tpu.vector_store %arg4[%c0_7, %c0_8], %10 {strides = array<i32>} : memref<8x32xf32, #tpu.memory_space<vmem>>, vector<8x32xf32>,
    return
  }
  func.func @transform_0(%arg0: i32) -> (i32, i32) {
    %c0_i32 = arith.constant 0 : i32
    %c0_i32_0 = arith.constant 0 : i32
    return %arg0, %c0_i32 : i32, i32
  }
  func.func @transform_1(%arg0: i32) -> (i32, i32) {
    %c0_i32 = arith.constant 0 : i32
    %c0_i32_0 = arith.constant 0 : i32
    %c0_i32_1 = arith.constant 0 : i32
    return %c0_i32, %c0_i32_0 : i32, i32
  }
  func.func @transform_2(%arg0: i32) -> (i32, i32) {
    %c0_i32 = arith.constant 0 : i32
    %c0_i32_0 = arith.constant 0 : i32
    %c0_i32_1 = arith.constant 0 : i32
    return %c0_i32, %c0_i32_0 : i32, i32
  }
  func.func @transform_3(%arg0: i32) -> (i32, i32) {
    %c0_i32 = arith.constant 0 : i32
    %c0_i32_0 = arith.constant 0 : i32
    return %arg0, %c0_i32 : i32, i32
  }
}

</mosaic_0001>

<bundles_post_ra>
// kernel: regressor_forward.1
= control target key start
LH: loop header
LB: loop body
LE: loop exit
PB: predicated region body
PF: predicated region fallthrough
CT: control target
= control target key end

     0   :  { %s376_s12 = smov 0   ;;  %s408_s0 = inlined_call_operand.vmem [shape: f32[16,32], index: 0, kind: input, shape index: {}]   ;;  %s409_s1 = inlined_call_operand.vmem [shape: f32[32,32], index: 1, kind: input, shape index: {}]   ;;  %s410_s2 = inlined_call_operand.vmem [shape: f32[1,32], index: 2, kind: input, shape index: {}]   ;;  %s411_s3 = inlined_call_operand.vmem [shape: f32[16,32], index: 3, kind: output, shape index: {}]  }
   0x1 LB: > { %s309_s13 = sadd.s32 4294967295, %s352_s12   ;;  %p313_p0 = scmp.ge.s32.totalorder %s352_s12, 1  ;;  %s352_s12 = sphi %s376_s12, %s13_s12  }
   0x2   : > { %p136_p1 = scmp.lt.s32.totalorder %s352_s12, 3 }
   0x4   : > { %p137_p2 = pnand %p313_p0, %p136_p1 }
   0x5   : > { %p158_p3 = scmp.lt.s32.totalorder (!%p137_p2), %s309_s13, 1 }
   0x6   : > { %140 = sbr.rel (%p137_p2) target bundleno = 219 (0xdb), region = 32 }
   0xb   : > { %v170_v0 = vld [vmem:[%s409_s1 + $0x18] sm:$0xff]  ;;  %v354_v1 = vmov 0.0   ;;  %v169_v2 = vld [vmem:[%s409_s1 + $0x10] sm:$0xff]  ;;  %vm355_vm0 = vmmov 0   ;;  %s413_s13 = smov (!%p158_p3, %s309_s13), 1  ;;  %v168_v3 = vld [vmem:[%s409_s1 + $0x8] sm:$0xff] }
   0xc   : > { %325 = vmatprep.subr.mxu0 %v354_v1  ;;  %333 = vmatprep.mubr.msk.f32.mxu0 %vm355_vm0, %v354_v1  ;;  %s314_s20 = sshll.u32 %s413_s13, 3  ;;  %v167_v4 = vld [vmem:[%s409_s1] sm:$0xff]  ;;  %vm178_vm1 = vcmask 261120  }
   0xd   : > { %326 = vmatpush3.msra.mxu0 %v170_v0  ;;  %s161_s25 = scalar_lea.vmem %s408_s0, %s314_s20  ;;  %v316_v6 = vld [vmem:[%s410_s2] ss:$0 sm:$0xff]  ;;  %s165_s30 = scalar_lea.vmem %s411_s3, %s314_s20 }
   0xe   : > { %327 = vmatprep.subr.mxu0 %v354_v1  ;;  %v166_v5 = vld [vmem:[%s161_s25] sm:$0xff] }
   0xf   : > { %328 = vmatpush3.msra.mxu0 %v169_v2 }
  0x10   : > { %329 = vmatprep.subr.mxu0 %v354_v1 }
  0x11   : > { %330 = vmatpush3.msra.mxu0 %v168_v3 }
  0x12   : > { %331 = vmatprep.subr.mxu0 %v354_v1 }
  0x13   : > { %332 = vmatpush3.msra.mxu0 %v167_v4 }
  0x14   : > { %334 = vmatmul.mubr.msk.f32.vlgmr.msra.gmra.mxu0 %vm178_vm1, %v166_v5 }
  0xd4   : > { %v248_v7 = vpop.f32.mrf.mxu0 }
  0xd5   : > { %v249_v8 = vadd.f32 %v316_v6, %v248_v7 }
  0xd6   : > { %v335_v9 = vpop.f32.mrf.mxu0 }
  0xd7   : > { %vm252_vm2 = vcmp.gt.f32.partialorder %v249_v8, 0.0  ;;  %v253_v10 = vmul.f32 0.01, %v249_v8 }
  0xd9   : > { %v254_v11 = vsel %vm252_vm2, %v249_v8, %v253_v10 }
  0xda   : > { %255 = vst.msk [vmem:[%s165_s30] sm:$0xff] %vm178_vm1, %v254_v11 }
  0xdb PF: > { %s13_s12 = sadd.s32 1, %s352_s12  }
  0xdc   : > { %p10_p4 = scmp.ge.s32.totalorder %s13_s12, 4  }
  0xde   :  { %12 = sbr.rel (!%p10_p4) target bundleno = 1 (0x1), region = 62 }

</bundles_post_ra>
